<compile_context>
chip_gen: v7x
topology: tpu7x:2x2x1
jax: 0.10.0
libtpu: 0.0.40
codegen_flags: <defaults>
</compile_context>

<pallas_src>
import math

import jax
import jax.numpy as jnp
from jax import lax
from jax.experimental import pallas as pl
from jax.experimental.pallas import tpu as pltpu


# ---------------------------------------------------------------------------
# Pallas kernel: 3-layer MLP.  Inputs are batch-major tiles; activations are
# feature-major [H, TB] (batch on lanes).  Weights are PyTorch-native [out,in].
# ---------------------------------------------------------------------------
def _critic_mlp_kernel(s_ref, a_ref, w1s_ref, w1a_ref, w2_ref, bw_ref, b3_ref,
                       o_ref):
    # s_ref: [TB, obs], a_ref: [TB, act]  (batch-major, contiguous DMA)
    # Contract on the last (feature) dims: [H, obs] x [TB, obs] -> [H, TB];
    # the thin RHS transpose is handled on-chip (XLU), never in HBM.
    dn = (((1,), (1,)), ((), ()))
    h = lax.dot_general(w1s_ref[...], s_ref[...], dn,
                        preferred_element_type=jnp.float32)
    h = h + lax.dot_general(w1a_ref[...], a_ref[...], dn,
                            preferred_element_type=jnp.float32)

    b1 = bw_ref[:, 0:1]                       # [H, 1]
    b2 = bw_ref[:, 1:2]                       # [H, 1]
    w3 = bw_ref[:, 2:3]                       # [H, 1]

    h = jnp.maximum(h + b1, 0.0)                                # [H, TB]
    h = jnp.dot(w2_ref[...], h, preferred_element_type=jnp.float32)
    h = jnp.maximum(h + b2, 0.0)                                # [H, TB]

    # Final Linear(H, 1): VPU multiply + sublane reduce -> lane-dense [1, TB].
    q = jnp.sum(h * w3, axis=0, keepdims=True)
    o_ref[...] = q + b3_ref[0, 0]                               # [1, TB]


# ---------------------------------------------------------------------------
# Wrapper: flatten plumbing + pallas_call with batch-tiled grid.
# ---------------------------------------------------------------------------
def critic_forward(state, action, params, *, block_batch=4096, use_bf16=False):
    """MLPActionCritic.forward: returns Q-values of shape state.shape[:-1]."""
    w1, b1, w2, b2, w3, b3 = params          # PyTorch layout: w [out, in]

    # action.flatten(state.ndim - 1)
    start = state.ndim - 1
    action = action.reshape(action.shape[:start] + (-1,))

    lead = state.shape[:-1]
    obs_dim = state.shape[-1]
    act_dim = action.shape[-1]
    H = w1.shape[0]

    state2 = state.reshape(-1, obs_dim)       # [B, obs]  (no transpose, no pad)
    action2 = action.reshape(-1, act_dim)     # [B, act]
    B = state2.shape[0]

    # Fuse the concat: split W1 along its input dimension.
    w1s = w1[:, :obs_dim]                     # [H, obs]
    w1a = w1[:, obs_dim:]                     # [H, act]
    bw = jnp.stack([b1, b2, w3.reshape(H)], axis=1).astype(jnp.float32)  # [H,3]
    b3c = b3.reshape(1, 1).astype(jnp.float32)

    # Optional reduced-precision input path (halves input HBM traffic).
    in_dtype = jnp.bfloat16 if use_bf16 else jnp.float32
    state2 = state2.astype(in_dtype)
    action2 = action2.astype(in_dtype)
    w1s = w1s.astype(in_dtype)
    w1a = w1a.astype(in_dtype)
    w2 = w2.astype(jnp.float32)

    # Batch tile: multiple of 128 lanes; keep >= 2 grid steps when possible so
    # the "parallel" batch axis can shard across v7x's two TensorCores.
    tb_req = max(128, (int(block_batch) // 128) * 128)
    half = max(128, pl.cdiv(pl.cdiv(B, 2), 128) * 128)
    tb = min(tb_req, half)
    grid = (pl.cdiv(B, tb),)                  # ragged tail masked by Pallas

    flops = 2 * B * (obs_dim * H + act_dim * H + H * H + H)
    in_bytes = jnp.dtype(in_dtype).itemsize
    bytes_accessed = (B * (obs_dim + act_dim) * in_bytes + 4 * B
                      + in_bytes * H * (obs_dim + act_dim)
                      + 4 * (H * H + 3 * H + 1))

    q = pl.pallas_call(
        _critic_mlp_kernel,
        out_shape=jax.ShapeDtypeStruct((1, B), jnp.float32),
        grid=grid,
        in_specs=[
            pl.BlockSpec((tb, obs_dim), lambda i: (i, 0)),   # state tile
            pl.BlockSpec((tb, act_dim), lambda i: (i, 0)),   # action tile
            pl.BlockSpec((H, obs_dim), lambda i: (0, 0)),    # W1[:, :obs]
            pl.BlockSpec((H, act_dim), lambda i: (0, 0)),    # W1[:, obs:]
            pl.BlockSpec((H, H), lambda i: (0, 0)),          # W2
            pl.BlockSpec((H, 3), lambda i: (0, 0)),          # [b1 | b2 | w3]
            pl.BlockSpec(memory_space=pltpu.MemorySpace.SMEM),  # b3 scalar
        ],
        out_specs=pl.BlockSpec((1, tb), lambda i: (0, i)),   # lane-dense row
        compiler_params=pltpu.CompilerParams(
            dimension_semantics=("parallel",),
            vmem_limit_bytes=40 * 1024 * 1024),
        cost_estimate=pl.CostEstimate(
            flops=flops, transcendentals=0, bytes_accessed=bytes_accessed),
    )(state2, action2, w1s, w1a, w2, bw, b3c)

    return q[0].reshape(lead)                 # squeeze(-1) + restore lead dims


# ---------------------------------------------------------------------------
# Deterministic parameter init (mirrors torch.nn.Linear default: U(-k, k),
# k = 1/sqrt(fan_in)).  PyTorch layout: W [out, in], b [out].
# ---------------------------------------------------------------------------
def init_params(key, input_size, hidden_size, hidden_layers):
    layer_sizes = (input_size, *([hidden_size] * hidden_layers), 1)
    params = []
    for in_size, out_size in zip(layer_sizes, layer_sizes[1:]):
        key, kw, kb = jax.random.split(key, 3)
        bound = 1.0 / math.sqrt(in_size)
        w = jax.random.uniform(kw, (out_size, in_size), jnp.float32,
                               minval=-bound, maxval=bound)
        b = jax.random.uniform(kb, (out_size,), jnp.float32,
                               minval=-bound, maxval=bound)
        params += [w, b]
    return tuple(params)


# ---------------------------------------------------------------------------
# Pure-JAX reference for correctness checking
# ---------------------------------------------------------------------------
def critic_forward_ref(state, action, params):
    w1, b1, w2, b2, w3, b3 = params
    start = state.ndim - 1
    action = action.reshape(action.shape[:start] + (-1,))
    x = jnp.concatenate([state, action], axis=-1)
    h = jnp.maximum(x @ w1.T + b1, 0.0)
    h = jnp.maximum(h @ w2.T + b2, 0.0)
    q = h @ w3.T + b3
    return q[..., 0]


if __name__ == "__main__":
    # Small shapes: batch=300 (exercises multi-step grid + ragged final block),
    # obs_dim=12, action shape (4,), hidden=32, 2 hidden layers.
    B, OBS_DIM, ACT_SHAPE, HIDDEN, LAYERS = 300, 12, (4,), 32, 2
    INPUT_SIZE = OBS_DIM + math.prod(ACT_SHAPE)

    key = jax.random.PRNGKey(0)
    k_state, k_action, k_params = jax.random.split(key, 3)

    state = jax.random.normal(k_state, (B, OBS_DIM), jnp.float32)
    action = jax.random.normal(k_action, (B,) + ACT_SHAPE, jnp.float32)
    params = init_params(k_params, INPUT_SIZE, HIDDEN, LAYERS)

    q = critic_forward(state, action, params)   # default tb -> 256, grid=(2,)
    jax.block_until_ready(q)

    q_ref = critic_forward_ref(state, action, params)
    assert q.shape == (B,), q.shape
    err = float(jnp.max(jnp.abs(q - q_ref)))
    assert jnp.allclose(q, q_ref, atol=1e-4, rtol=1e-4), err

    print("KERNEL_OK")
</pallas_src>

<mosaic_0001>
module attributes {stable_mosaic.version = 11 : i64} {
  func.func @_critic_mlp_kernel(%arg0: i32, %arg1: memref<256x12xf32, #tpu.memory_space<vmem>>, %arg2: memref<256x4xf32, #tpu.memory_space<vmem>>, %arg3: memref<32x12xf32, #tpu.memory_space<vmem>>, %arg4: memref<32x4xf32, #tpu.memory_space<vmem>>, %arg5: memref<32x32xf32, #tpu.memory_space<vmem>>, %arg6: memref<32x3xf32, #tpu.memory_space<vmem>>, %arg7: memref<1x1xf32, #tpu.memory_space<smem>>, %arg8: memref<1x256xf32, #tpu.memory_space<vmem>>) attributes {dimension_semantics = [#tpu.dimension_semantics<parallel>], iteration_bounds = array<i64: 2>, scalar_prefetch = 0 : i64, scratch_operands = 0 : i64, tpu.core_type = #tpu.core_type<tc>, window_params = [{transform_indices = @transform_0, window_bounds = array<i64: 256, 12>}, {transform_indices = @transform_1, window_bounds = array<i64: 256, 4>}, {pipeline_mode = #tpu.pipeline_mode<synchronous>, transform_indices = @transform_2, window_bounds = array<i64: 32, 12>}, {pipeline_mode = #tpu.pipeline_mode<synchronous>, transform_indices = @transform_3, window_bounds = array<i64: 32, 4>}, {pipeline_mode = #tpu.pipeline_mode<synchronous>, transform_indices = @transform_4, window_bounds = array<i64: 32, 32>}, {pipeline_mode = #tpu.pipeline_mode<synchronous>, transform_indices = @transform_5, window_bounds = array<i64: 32, 3>}, {transform_indices = @transform_6, window_bounds = array<i64: 1, 1>}, {transform_indices = @transform_7, window_bounds = array<i64: 1, 256>}]} {
    %c0 = arith.constant 0 : index
    %c0_0 = arith.constant 0 : index
    %0 = vector.load %arg3[%c0, %c0_0] : memref<32x12xf32, #tpu.memory_space<vmem>>, vector<32x12xf32>
    %c0_1 = arith.constant 0 : index
    %c0_2 = arith.constant 0 : index
    %1 = vector.load %arg1[%c0_1, %c0_2] : memref<256x12xf32, #tpu.memory_space<vmem>>, vector<256x12xf32>
    %cst = arith.constant dense<0.000000e+00> : vector<32x256xf32>
    %2 = tpu.matmul %0, %1, %cst {dimension_numbers = #tpu.dot_dimension_numbers<[1], [1], [0], [0], [0, 0, 1, 0], [], []>} : vector<32x12xf32>, vector<256x12xf32>, vector<32x256xf32> -> vector<32x256xf32>
    %c0_3 = arith.constant 0 : index
    %c0_4 = arith.constant 0 : index
    %3 = vector.load %arg4[%c0_3, %c0_4] : memref<32x4xf32, #tpu.memory_space<vmem>>, vector<32x4xf32>
    %c0_5 = arith.constant 0 : index
    %c0_6 = arith.constant 0 : index
    %4 = vector.load %arg2[%c0_5, %c0_6] : memref<256x4xf32, #tpu.memory_space<vmem>>, vector<256x4xf32>
    %cst_7 = arith.constant dense<0.000000e+00> : vector<32x256xf32>
    %5 = tpu.matmul %3, %4, %cst_7 {dimension_numbers = #tpu.dot_dimension_numbers<[1], [1], [0], [0], [0, 0, 1, 0], [], []>} : vector<32x4xf32>, vector<256x4xf32>, vector<32x256xf32> -> vector<32x256xf32>
    %6 = arith.addf %2, %5 : vector<32x256xf32>
    %c0_8 = arith.constant 0 : index
    %c0_9 = arith.constant 0 : index
    %7 = vector.load %arg6[%c0_8, %c0_9] : memref<32x3xf32, #tpu.memory_space<vmem>>, vector<32x1xf32>
    %c0_10 = arith.constant 0 : index
    %c1 = arith.constant 1 : index
    %8 = vector.load %arg6[%c0_10, %c1] : memref<32x3xf32, #tpu.memory_space<vmem>>, vector<32x1xf32>
    %c0_11 = arith.constant 0 : index
    %c2 = arith.constant 2 : index
    %9 = vector.load %arg6[%c0_11, %c2] : memref<32x3xf32, #tpu.memory_space<vmem>>, vector<32x1xf32>
    %10 = vector.broadcast %7 : vector<32x1xf32> to vector<32x256xf32>
    %11 = arith.addf %6, %10 : vector<32x256xf32>
    %cst_12 = arith.constant 0.000000e+00 : f32
    %12 = vector.broadcast %cst_12 : f32 to vector<32x256xf32>
    %13 = arith.maximumf %11, %12 : vector<32x256xf32>
    %c0_13 = arith.constant 0 : index
    %c0_14 = arith.constant 0 : index
    %14 = vector.load %arg5[%c0_13, %c0_14] : memref<32x32xf32, #tpu.memory_space<vmem>>, vector<32x32xf32>
    %cst_15 = arith.constant dense<0.000000e+00> : vector<32x256xf32>
    %15 = tpu.matmul %14, %13, %cst_15 {dimension_numbers = #tpu.dot_dimension_numbers<[1], [0], [0], [1], [0, 0, 1, 1], [], []>} : vector<32x32xf32>, vector<32x256xf32>, vector<32x256xf32> -> vector<32x256xf32>
    %16 = vector.broadcast %8 : vector<32x1xf32> to vector<32x256xf32>
    %17 = arith.addf %15, %16 : vector<32x256xf32>
    %cst_16 = arith.constant 0.000000e+00 : f32
    %18 = vector.broadcast %cst_16 : f32 to vector<32x256xf32>
    %19 = arith.maximumf %17, %18 : vector<32x256xf32>
    %20 = vector.broadcast %9 : vector<32x1xf32> to vector<32x256xf32>
    %21 = arith.mulf %19, %20 : vector<32x256xf32>
    %cst_17 = arith.constant dense<0.000000e+00> : vector<256xf32>
    %22 = vector.multi_reduction <add>, %21, %cst_17 [0] : vector<32x256xf32> to vector<256xf32>
    %23 = vector.shape_cast %22 : vector<256xf32> to vector<1x256xf32>
    %c0_18 = arith.constant 0 : index
    %c0_19 = arith.constant 0 : index
    %24 = memref.load %arg7[%c0_18, %c0_19] : memref<1x1xf32, #tpu.memory_space<smem>>
    %25 = vector.broadcast %24 : f32 to vector<1x256xf32>
    %26 = arith.addf %23, %25 : vector<1x256xf32>
    %c0_20 = arith.constant 0 : index
    %c0_21 = arith.constant 0 : index
    %27 = vector.load %arg8[%c0_20, %c0_21] : memref<1x256xf32, #tpu.memory_space<vmem>>, vector<1x256xf32>
    tpu.vector_store %arg8[%c0_20, %c0_21], %26 {strides = array<i32>} : memref<1x256xf32, #tpu.memory_space<vmem>>, vector<1x256xf32>,
    return
  }
  func.func @transform_0(%arg0: i32) -> (i32, i32) {
    %c0_i32 = arith.constant 0 : i32
    %c0_i32_0 = arith.constant 0 : i32
    return %arg0, %c0_i32 : i32, i32
  }
  func.func @transform_1(%arg0: i32) -> (i32, i32) {
    %c0_i32 = arith.constant 0 : i32
    %c0_i32_0 = arith.constant 0 : i32
    return %arg0, %c0_i32 : i32, i32
  }
  func.func @transform_2(%arg0: i32) -> (i32, i32) {
    %c0_i32 = arith.constant 0 : i32
    %c0_i32_0 = arith.constant 0 : i32
    %c0_i32_1 = arith.constant 0 : i32
    return %c0_i32, %c0_i32_0 : i32, i32
  }
  func.func @transform_3(%arg0: i32) -> (i32, i32) {
    %c0_i32 = arith.constant 0 : i32
    %c0_i32_0 = arith.constant 0 : i32
    %c0_i32_1 = arith.constant 0 : i32
    return %c0_i32, %c0_i32_0 : i32, i32
  }
  func.func @transform_4(%arg0: i32) -> (i32, i32) {
    %c0_i32 = arith.constant 0 : i32
    %c0_i32_0 = arith.constant 0 : i32
    %c0_i32_1 = arith.constant 0 : i32
    return %c0_i32, %c0_i32_0 : i32, i32
  }
  func.func @transform_5(%arg0: i32) -> (i32, i32) {
    %c0_i32 = arith.constant 0 : i32
    %c0_i32_0 = arith.constant 0 : i32
    %c0_i32_1 = arith.constant 0 : i32
    return %c0_i32, %c0_i32_0 : i32, i32
  }
  func.func @transform_6(%arg0: i32) -> (i32, i32) {
    %c0_i32 = arith.constant 0 : i32
    %c0_i32_0 = arith.constant 0 : i32
    %c0_i32_1 = arith.constant 0 : i32
    return %c0_i32, %c0_i32_0 : i32, i32
  }
  func.func @transform_7(%arg0: i32) -> (i32, i32) {
    %c0_i32 = arith.constant 0 : i32
    %c0_i32_0 = arith.constant 0 : i32
    return %c0_i32, %arg0 : i32, i32
  }
}

</mosaic_0001>

<bundles_post_ra>
// kernel: tpu_custom_call.1
= control target key start
LH: loop header
LB: loop body
LE: loop exit
PB: predicated region body
PF: predicated region fallthrough
CT: control target
= control target key end

     0   :  { %s1954_s0 = inlined_call_operand.vmem [shape: f32[300,12], index: 0, kind: input, shape index: {}]   ;;  %s1955_s1 = inlined_call_operand.vmem [shape: f32[300,4], index: 1, kind: input, shape index: {}]   ;;  %s1956_s2 = inlined_call_operand.vmem [shape: f32[32,12], index: 2, kind: input, shape index: {}]   ;;  %s1957_s3 = inlined_call_operand.vmem [shape: f32[32,4], index: 3, kind: input, shape index: {}]   ;;  %s1958_s4 = inlined_call_operand.vmem [shape: f32[32,32], index: 4, kind: input, shape index: {}]   ;;  %s1959_s5 = inlined_call_operand.vmem [shape: f32[32,3], index: 5, kind: input, shape index: {}]   ;;  %s1960_s6 = inlined_call_operand.<no memory space> [shape: f32[1,1], index: 6, kind: input, shape index: {}]   ;;  %s1961_s7 = inlined_call_operand.hbm [shape: f32[1,300], index: 7, kind: output, shape index: {}]  }
   0x1   :  { %12 = sst [smem:[#allocation2]] %s1960_s6 }
   0x2   :  { %13 = vsyncpa [#allocation4], 0 }
   0x3   :  { %15 = vsyncpa [#allocation4 + $0x1], 0  ;;  %s1596_s26 = smov 0   ;;  %s1598_s27 = smov 0  }
   0x4   :  { %s1600_s28 = smov 0   ;;  %s1602_s29 = smov 0  }
   0x5 LB: > { %s1617_s6 = sadd.s32 4294967295, %s1545_s29   ;;  %s1145_s30 = sadd.s32 4294967294, %s1545_s29   ;;  %s1545_s29 = sphi %s1602_s29, %s1971_s29   ;;  %s1541_s28 = sphi %s1600_s28, %s1970_s28   ;;  %s1537_s27 = sphi %s1598_s27, %s1969_s27   ;;  %s1533_s26 = sphi %s1596_s26, %s1968_s26  }
   0x6   : > { %s1621_s8 = sadd.s32 1, %s1545_s29   ;;  %s185_s9 = sadd.s32 1, %s1541_s28 }
   0x7   : > { %s182_s10 = ssub.s32 %s1545_s29, %s1621_s8  ;;  %p195_p0 = scmp.ne.s32.totalorder %s1541_s28, %s1537_s27 }
   0x8   : > { %p183_p1 = scmp.eq.s32.totalorder %s182_s10, 0  ;;  %p196_p2 = scmp.eq.s32.totalorder %s1617_s6, 1 }
   0x9   : > { %p201_p3 = scmp.ne.s32.totalorder %s1537_s27, %s1533_s26  ;;  %p202_p4 = scmp.eq.s32.totalorder %s1145_s30, 1 }
   0xa   : > { %s1632_s11 = scalar_select %p183_p1, %s1541_s28, %s185_s9  }
   0xb   : > { %p1634_p5 = por %p196_p2, %p195_p0  ;;  %p1638_p6 = por %p202_p4, %p201_p3 }
   0xc   : > { %p1148_p7 = scmp.ge.s32.totalorder %s1545_s29, 1  ;;  %p269_p8 = scmp.lt.s32.totalorder %s1545_s29, 3 }
   0xe   : > { %p270_p9 = pnand %p1148_p7, %p269_p8 }
   0xf   : > { %s1645_s14 = sshll.u32 (!%p270_p9), %s1617_s6, 5  ;;  %vm419_vm0 = vcmask (!%p270_p9), 31744   ;;  %vm617_vm1 = vcmask (!%p270_p9), 97280   ;;  %v1650_v0 = vld [vmem:[%s1957_s3] sm:$0xff] (!%p270_p9)  ;;  %v1547_v2 = vmov (!%p270_p9), 0   ;;  %v1672_v4 = vld [vmem:[%s1959_s5 + $0x10] sm:$0xff] (!%p270_p9) }
  0x10   : > { %273 = sbr.rel (%p270_p9) target bundleno = 610 (0x262), region = 48  ;;  %v1655_v1 = vld [vmem:[%s1956_s2] sm:$0xff] (!%p270_p9)  ;;  %p319_p10 = scmp.lt.s32.totalorder (!%p270_p9), %s1645_s14, 37  ;;  %1270 = vmatprep.mubr.msk.f32.mxu1 (!%p270_p9), %vm419_vm0, %v1650_v0  ;;  %1477 = vset.pattern.permute.xlu0 (!%p270_p9), %v1547_v2  ;;  %vm1676_vm2 = vmpackc.low (!%p270_p9), %vm419_vm0, %vm419_vm0  ;;  %v1683_v6 = vld [vmem:[%s1959_s5 + $0x8] sm:$0xff] (!%p270_p9)  ;;  %vm875_vm4 = vcmask (!%p270_p9), 261120  }
  0x11   : > { %1310 = vmatprep.mubr.msk.f32.mxu0 (!%p270_p9), %vm617_vm1, %v1655_v1  ;;  %1478 = vset.pattern.permute.xlu1 (!%p270_p9), %v1547_v2  ;;  %v1666_v3 = vld [vmem:[%s1959_s5] sm:$0xff] (!%p270_p9)  ;;  %vm1698_vm3 = vmpackc.low (!%p270_p9), %vm617_vm1, %vm617_vm1  ;;  %v1705_v8 = vld [vmem:[%s1959_s5 + $0x18] sm:$0xff] (!%p270_p9)  ;;  %s311_s9 = sand.u32 (!%p270_p9), 1, %s1537_s27   ;;  %s1027_s10 = sld [smem:[#allocation2]] (!%p270_p9) }
  0x12   : > { %821 = vperm.xlu0 (!%p270_p9), %1477, %v1666_v3   ;;  %831 = vperm.xlu1 (!%p270_p9), %1478, %v1672_v4   ;;  %v385_v5 = vld [vmem:[%s1957_s3 + $0x10] sm:$0xff] (!%p270_p9)  ;;  %s1900_s17 = scalar_lea.sflag (!%p270_p9), [#allocation4], %s311_s9 }
  0x13   : > { %v349_v7 = vld [vmem:[%s1956_s2 + $0x10] sm:$0xff] (!%p270_p9) }
  0x16   : > { %826 = vperm.xlu0 (!%p270_p9), %1477, %v1683_v6   ;;  %836 = vperm.xlu1 (!%p270_p9), %1478, %v1705_v8  }
  0x17   : > { %s320_s19 = scalar_select %p319_p10, %s1645_s14, 37 }
  0x19   : > { %s1151_s24 = sshll.u32 %s320_s19, 3 }
  0x1a   : > { %s1689_s15 = scalar_lea.vmem %s1955_s1, %s1151_s24  ;;  %s1694_s18 = scalar_lea.vmem %s1954_s0, %s1151_s24 }
  0x1b   : > { %v403_v9 = vld [vmem:[%s1689_s15 + $0x80] sm:$0xff]  ;;  %v404_v10 = vld [vmem:[%s1689_s15 + $0x88] sm:$0xff]  ;;  %v405_v20 = vld [vmem:[%s1689_s15 + $0x90] sm:$0xff] }
  0x1c   : > { %v367_v11 = vld [vmem:[%s1694_s18 + $0x80] sm:$0xff]  ;;  %v1318_v12 = vpack.c.bf16 %v404_v10, %v403_v9  ;;  %v368_v13 = vld [vmem:[%s1694_s18 + $0x88] sm:$0xff]  ;;  %v406_v22 = vld [vmem:[%s1689_s15 + $0x98] sm:$0xff] }
  0x1d   : > { %v387_v14 = vld [vmem:[%s1689_s15] sm:$0xff]  ;;  %v388_v15 = vld [vmem:[%s1689_s15 + $0x8] sm:$0xff]  ;;  %v1366_v16 = vpack.c.bf16 %v368_v13, %v367_v11  ;;  %v369_v23 = vld [vmem:[%s1694_s18 + $0x90] sm:$0xff]  ;;  %v1324_v25 = vpack.c.bf16 %v406_v22, %v405_v20 }
  0x1e   : > { %v1321_v17 = vpack.c.bf16 %v388_v15, %v387_v14  ;;  %v351_v18 = vld [vmem:[%s1694_s18] sm:$0xff]  ;;  %v352_v19 = vld [vmem:[%s1694_s18 + $0x8] sm:$0xff]  ;;  %1320 = vmatprep.subr.msk.bf16.mxu1 %vm1676_vm2, %v1318_v12  ;;  %v370_v24 = vld [vmem:[%s1694_s18 + $0x98] sm:$0xff] }
  0x1f   : > { %v1369_v21 = vpack.c.bf16 %v352_v19, %v351_v18  ;;  %1368 = vmatprep.subr.msk.bf16.mxu0 %vm1698_vm3, %v1366_v16  ;;  %v1372_v26 = vpack.c.bf16 %v370_v24, %v369_v23  ;;  %v389_v27 = vld [vmem:[%s1689_s15 + $0x10] sm:$0xff]  ;;  %v390_v28 = vld [vmem:[%s1689_s15 + $0x18] sm:$0xff]  ;;  %v407_v31 = vld [vmem:[%s1689_s15 + $0xa0] sm:$0xff] }
  0x20   : > { %1323 = vmatpush3.bf16.xpose.msk.msra.mxu1 %vm1676_vm2, %v1321_v17  ;;  %v353_v29 = vld [vmem:[%s1694_s18 + $0x10] sm:$0xff]  ;;  %v354_v30 = vld [vmem:[%s1694_s18 + $0x18] sm:$0xff]  ;;  %v408_v32 = vld [vmem:[%s1689_s15 + $0xa8] sm:$0xff]  ;;  %v1327_v35 = vpack.c.bf16 %v390_v28, %v389_v27 }
  0x21   : > { %1371 = vmatpush3.bf16.xpose.msk.msra.mxu0 %vm1698_vm3, %v1369_v21  ;;  %1326 = vmatprep.subr.msk.bf16.mxu1 %vm1676_vm2, %v1324_v25  ;;  %v371_v33 = vld [vmem:[%s1694_s18 + $0xa0] sm:$0xff]  ;;  %v372_v34 = vld [vmem:[%s1694_s18 + $0xa8] sm:$0xff]  ;;  %v1375_v36 = vpack.c.bf16 %v354_v30, %v353_v29  ;;  %v1330_v37 = vpack.c.bf16 %v408_v32, %v407_v31  ;;  %v409_v43 = vld [vmem:[%s1689_s15 + $0xb0] sm:$0xff] }
  0x22   : > { %1374 = vmatprep.subr.msk.bf16.mxu0 %vm1698_vm3, %v1372_v26  ;;  %v1378_v38 = vpack.c.bf16 %v372_v34, %v371_v33  ;;  %v391_v39 = vld [vmem:[%s1689_s15 + $0x20] sm:$0xff]  ;;  %v392_v40 = vld [vmem:[%s1689_s15 + $0x28] sm:$0xff]  ;;  %v410_v44 = vld [vmem:[%s1689_s15 + $0xb8] sm:$0xff] }
  0x23   : > { %v355_v41 = vld [vmem:[%s1694_s18 + $0x20] sm:$0xff]  ;;  %v356_v42 = vld [vmem:[%s1694_s18 + $0x28] sm:$0xff]  ;;  %v373_v45 = vld [vmem:[%s1694_s18 + $0xb0] sm:$0xff]  ;;  %v1333_v47 = vpack.c.bf16 %v392_v40, %v391_v39  ;;  %v1336_v49 = vpack.c.bf16 %v410_v44, %v409_v43 }
  0x24   : > { %v374_v46 = vld [vmem:[%s1694_s18 + $0xb8] sm:$0xff]  ;;  %v1381_v48 = vpack.c.bf16 %v356_v42, %v355_v41  ;;  %v393_v51 = vld [vmem:[%s1689_s15 + $0x30] sm:$0xff]  ;;  %v411_v55 = vld [vmem:[%s1689_s15 + $0xc0] sm:$0xff] }
  0x25   : > { %v1384_v50 = vpack.c.bf16 %v374_v46, %v373_v45  ;;  %v394_v52 = vld [vmem:[%s1689_s15 + $0x38] sm:$0xff]  ;;  %v357_v53 = vld [vmem:[%s1694_s18 + $0x30] sm:$0xff]  ;;  %v412_v56 = vld [vmem:[%s1689_s15 + $0xc8] sm:$0xff] }
  0x26   : > { %v358_v54 = vld [vmem:[%s1694_s18 + $0x38] sm:$0xff]  ;;  %v375_v57 = vld [vmem:[%s1694_s18 + $0xc0] sm:$0xff]  ;;  %v376_v58 = vld [vmem:[%s1694_s18 + $0xc8] sm:$0xff]  ;;  %v1339_v59 = vpack.c.bf16 %v394_v52, %v393_v51  ;;  %v1342_v61 = vpack.c.bf16 %v412_v56, %v411_v55  ;;  %v1548_v51 = vmov 0.0   ;;  %v1549_v52 = vmov 1  }
  0x27   : > { %v1387_v60 = vpack.c.bf16 %v358_v54, %v357_v53  ;;  %v1390_v62 = vpack.c.bf16 %v376_v58, %v375_v57  ;;  %v395_v63 = vld [vmem:[%s1689_s15 + $0x40] sm:$0xff]  ;;  %v396_v2 = vld [vmem:[%s1689_s15 + $0x48] sm:$0xff]  ;;  %v413_v11 = vld [vmem:[%s1689_s15 + $0xd0] sm:$0xff]  ;;  %1480 = vset.pattern.permute.xlu1 %v1549_v52  ;;  %1479 = vset.pattern.permute.xlu0 %v1549_v52  ;;  %v1550_v53 = vmov 2  }
  0x28   : > { %1329 = vmatpush3.bf16.xpose.msk.msra.mxu1 %vm1676_vm2, %v1327_v35  ;;  %v359_v9 = vld [vmem:[%s1694_s18 + $0x40] sm:$0xff]  ;;  %v360_v10 = vld [vmem:[%s1694_s18 + $0x48] sm:$0xff]  ;;  %v414_v12 = vld [vmem:[%s1689_s15 + $0xd8] sm:$0xff]  ;;  %v1345_v15 = vpack.c.bf16 %v396_v2, %v395_v63  ;;  %864 = vperm.xlu1 %1480, %v1683_v6  }
  0x29   : > { %1377 = vmatpush3.bf16.xpose.msk.msra.mxu0 %vm1698_vm3, %v1375_v36  ;;  %1332 = vmatprep.subr.msk.bf16.mxu1 %vm1676_vm2, %v1330_v37  ;;  %v377_v13 = vld [vmem:[%s1694_s18 + $0xd0] sm:$0xff]  ;;  %v378_v14 = vld [vmem:[%s1694_s18 + $0xd8] sm:$0xff]  ;;  %v1393_v16 = vpack.c.bf16 %v360_v10, %v359_v9  ;;  %v1348_v17 = vpack.c.bf16 %v414_v12, %v413_v11  ;;  %v415_v23 = vld [vmem:[%s1689_s15 + $0xe0] sm:$0xff] }
  0x2a   : > { %1380 = vmatprep.subr.msk.bf16.mxu0 %vm1698_vm3, %v1378_v38  ;;  %v1396_v18 = vpack.c.bf16 %v378_v14, %v377_v13  ;;  %v397_v19 = vld [vmem:[%s1689_s15 + $0x50] sm:$0xff]  ;;  %v398_v20 = vld [vmem:[%s1689_s15 + $0x58] sm:$0xff]  ;;  %v416_v24 = vld [vmem:[%s1689_s15 + $0xe8] sm:$0xff]  ;;  %860 = vperm.xlu0 %1479, %v1666_v3  }
  0x2b   : > { %v361_v21 = vld [vmem:[%s1694_s18 + $0x50] sm:$0xff]  ;;  %v362_v22 = vld [vmem:[%s1694_s18 + $0x58] sm:$0xff]  ;;  %v379_v25 = vld [vmem:[%s1694_s18 + $0xe0] sm:$0xff]  ;;  %v1351_v27 = vpack.c.bf16 %v398_v20, %v397_v19  ;;  %v1354_v29 = vpack.c.bf16 %v416_v24, %v415_v23 }
  0x2c   : > { %v380_v26 = vld [vmem:[%s1694_s18 + $0xe8] sm:$0xff]  ;;  %v1399_v28 = vpack.c.bf16 %v362_v22, %v361_v21  ;;  %v399_v31 = vld [vmem:[%s1689_s15 + $0x60] sm:$0xff]  ;;  %v417_v35 = vld [vmem:[%s1689_s15 + $0xf0] sm:$0xff]  ;;  %868 = vperm.xlu1 %1480, %v1672_v4  }
  0x2d   : > { %v1402_v30 = vpack.c.bf16 %v380_v26, %v379_v25  ;;  %v400_v32 = vld [vmem:[%s1689_s15 + $0x68] sm:$0xff]  ;;  %v363_v33 = vld [vmem:[%s1694_s18 + $0x60] sm:$0xff]  ;;  %v418_v36 = vld [vmem:[%s1689_s15 + $0xf8] sm:$0xff] }
  0x2e   : > { %v364_v34 = vld [vmem:[%s1694_s18 + $0x68] sm:$0xff]  ;;  %v381_v37 = vld [vmem:[%s1694_s18 + $0xf0] sm:$0xff]  ;;  %v382_v38 = vld [vmem:[%s1694_s18 + $0xf8] sm:$0xff]  ;;  %v1357_v39 = vpack.c.bf16 %v400_v32, %v399_v31  ;;  %v1360_v41 = vpack.c.bf16 %v418_v36, %v417_v35  ;;  %872 = vperm.xlu0 %1479, %v1705_v8  }
  0x2f   : > { %v1405_v40 = vpack.c.bf16 %v364_v34, %v363_v33  ;;  %v1408_v42 = vpack.c.bf16 %v382_v38, %v381_v37  ;;  %v401_v43 = vld [vmem:[%s1689_s15 + $0x70] sm:$0xff]  ;;  %v402_v44 = vld [vmem:[%s1689_s15 + $0x78] sm:$0xff]  ;;  %s1149_s15 = sshll.u32 %s311_s9, 1 }
  0x30   : > { %1335 = vmatpush3.bf16.xpose.msk.msra.mxu1 %vm1676_vm2, %v1333_v47  ;;  %v365_v45 = vld [vmem:[%s1694_s18 + $0x70] sm:$0xff]  ;;  %v366_v46 = vld [vmem:[%s1694_s18 + $0x78] sm:$0xff]  ;;  %v1363_v47 = vpack.c.bf16 %v402_v44, %v401_v43  ;;  %1481 = vset.pattern.permute.xlu1 %v1550_v53  ;;  %v856_v44 = vld [vmem:[%s1958_s4 + $0x8] sm:$0xff]  ;;  %s313_s16 = scalar_lea.vmem [#allocation3], %s1149_s15  ;;  %s1231_s18 = sshll.u32 (%p1634_p5), %s1617_s6, 1 }
  0x31   : > { %1383 = vmatpush3.bf16.xpose.msk.msra.mxu0 %vm1698_vm3, %v1381_v48  ;;  %1338 = vmatprep.subr.msk.bf16.mxu1 %vm1676_vm2, %v1336_v49  ;;  %v1411_v48 = vpack.c.bf16 %v366_v46, %v365_v45  ;;  %v384_v49 = vld [vmem:[%s1957_s3 + $0x8] sm:$0xff]  ;;  %v857_v43 = vld [vmem:[%s1958_s4 + $0x10] sm:$0xff]  ;;  %v858_v45 = vld [vmem:[%s1958_s4 + $0x18] sm:$0xff]  ;;  %s1063_s19 = ssub.s32 (%p1634_p5), 3, %s1231_s18 }
  0x32   : > { %1386 = vmatprep.subr.msk.bf16.mxu0 %vm1698_vm3, %v1384_v50  ;;  %v348_v50 = vld [vmem:[%s1956_s2 + $0x8] sm:$0xff]  ;;  %1482 = vset.pattern.permute.xlu0 %v1550_v53  ;;  %p1064_p11 = scmp.lt.s32.totalorder (%p1634_p5), %s1063_s19, 2 }
  0x33   : > { %986 = vperm.xlu1 %1481, %v1666_v3   ;;  %990 = vperm.xlu0 %1482, %v1683_v6  }
  0x37   : > { %994 = vperm.xlu1 %1481, %v1672_v4  }
  0x38   : > { %1341 = vmatpush3.bf16.xpose.msk.msra.mxu1 %vm1676_vm2, %v1339_v59 }
  0x39   : > { %1389 = vmatpush3.bf16.xpose.msk.msra.mxu0 %vm1698_vm3, %v1387_v60  ;;  %1344 = vmatprep.subr.msk.bf16.mxu1 %vm1676_vm2, %v1342_v61 }
  0x3a   : > { %1392 = vmatprep.subr.msk.bf16.mxu0 %vm1698_vm3, %v1390_v62 }
  0x3b   : > { %998 = vperm.xlu1 %1481, %v1705_v8  }
  0x40   : > { %1347 = vmatpush3.bf16.xpose.msk.msra.mxu1 %vm1676_vm2, %v1345_v15 }
  0x41   : > { %1395 = vmatpush3.bf16.xpose.msk.msra.mxu0 %vm1698_vm3, %v1393_v16  ;;  %1350 = vmatprep.subr.msk.bf16.mxu1 %vm1676_vm2, %v1348_v17 }
  0x42   : > { %1398 = vmatprep.subr.msk.bf16.mxu0 %vm1698_vm3, %v1396_v18 }
  0x48   : > { %1353 = vmatpush3.bf16.xpose.msk.msra.mxu1 %vm1676_vm2, %v1351_v27 }
  0x49   : > { %1401 = vmatpush3.bf16.xpose.msk.msra.mxu0 %vm1698_vm3, %v1399_v28  ;;  %1356 = vmatprep.subr.msk.bf16.mxu1 %vm1676_vm2, %v1354_v29 }
  0x4a   : > { %1404 = vmatprep.subr.msk.bf16.mxu0 %vm1698_vm3, %v1402_v30 }
  0x50   : > { %1359 = vmatpush3.bf16.xpose.msk.msra.mxu1 %vm1676_vm2, %v1357_v39 }
  0x51   : > { %1407 = vmatpush3.bf16.xpose.msk.msra.mxu0 %vm1698_vm3, %v1405_v40  ;;  %1362 = vmatprep.subr.msk.bf16.mxu1 %vm1676_vm2, %v1360_v41 }
  0x52   : > { %1410 = vmatprep.subr.msk.bf16.mxu0 %vm1698_vm3, %v1408_v42  ;;  %v855_v42 = vld [vmem:[%s1958_s4] sm:$0xff] }
  0x58   : > { %1365 = vmatpush3.bf16.xpose.msk.msra.mxu1 %vm1676_vm2, %v1363_v47 }
  0x59   : > { %1413 = vmatpush3.bf16.xpose.msk.msra.mxu0 %vm1698_vm3, %v1411_v48 }
  0x5f   : > { %1271 = vmatmul.mubr.msk.f32.vlgmr.msra.gmra.mrb[0].mxu1 %vm419_vm0, %v1650_v0  ;;  %v386_v0 = vld [vmem:[%s1957_s3 + $0x18] sm:$0xff] }
  0x60   : > { %1311 = vmatmul.mubr.msk.f32.vlgmr.msra.gmra.mrb[0].mxu0 %vm617_vm1, %v1655_v1  ;;  %1272 = vmatprep.mubr.msk.f32.mxu1 %vm419_vm0, %v384_v49  ;;  %v350_v1 = vld [vmem:[%s1956_s2 + $0x18] sm:$0xff] }
  0x61   : > { %1312 = vmatprep.mubr.msk.f32.mxu0 %vm617_vm1, %v348_v50 }
  0x63   : > { %1273 = vmatmul.mubr.msk.f32.gmra.mrb[2].mxu1 %vm419_vm0, %v384_v49 }
  0x64   : > { %1313 = vmatmul.mubr.msk.f32.gmra.mrb[2].mxu0 %vm617_vm1, %v348_v50  ;;  %1274 = vmatprep.mubr.msk.f32.mxu1 %vm419_vm0, %v385_v5 }
  0x65   : > { %1314 = vmatprep.mubr.msk.f32.mxu0 %vm617_vm1, %v349_v7 }
  0x67   : > { %1275 = vmatmul.mubr.msk.f32.gmra.mrb[4].mxu1 %vm419_vm0, %v385_v5 }
  0x68   : > { %1315 = vmatmul.mubr.msk.f32.gmra.mrb[4].mxu0 %vm617_vm1, %v349_v7  ;;  %1276 = vmatprep.mubr.msk.f32.mxu1 %vm419_vm0, %v386_v0 }
  0x69   : > { %1316 = vmatprep.mubr.msk.f32.mxu0 %vm617_vm1, %v350_v1 }
  0x6b   : > { %1277 = vmatmul.mubr.msk.f32.gmra.mrb[6].mxu1 %vm419_vm0, %v386_v0 }
  0x6c   : > { %1317 = vmatmul.mubr.msk.f32.gmra.mrb[6].mxu0 %vm617_vm1, %v350_v1  ;;  %964 = vmatprep.mubr.f32.mxu1 %v1548_v51 }
  0x6d   : > { %952 = vmatprep.mubr.f32.mxu0 %v1548_v51 }
  0x91   : > { %v822_v54 = vpop.permute.xlu0 %821  ;;  %v832_v4 = vpop.permute.xlu1 %831 }
  0x95   : > { %v827_v61 = vpop.permute.xlu0 %826  ;;  %v837_v32 = vpop.permute.xlu1 %836 }
  0xa7   : > { %v865_v46 = vpop.permute.xlu1 %864 }
  0xa9   : > { %v861_v48 = vpop.permute.xlu0 %860 }
  0xab   : > { %v869_v47 = vpop.permute.xlu1 %868 }
  0xad   : > { %v873_v52 = vpop.permute.xlu0 %872 }
  0xb2   : > { %v987_v49 = vpop.permute.xlu1 %986 }
 0x132   : > { %v594_v55 = vpop.f32.mrb[0].mxu1 }
 0x133   : > { %v792_v56 = vpop.f32.mrb[0].mxu0  ;;  %v596_v57 = vpop.f32.mrb[1].mxu1 }
 0x134   : > { %v793_v58 = vadd.f32 %v792_v56, %v594_v55  ;;  %v794_v59 = vpop.f32.mrb[1].mxu0 }
 0x135   : > { %v795_v60 = vadd.f32 %v794_v59, %v596_v57 }
 0x136   : > { %v600_v62 = vpop.f32.mrb[2].mxu1  ;;  %v839_v9 = vadd.f32 %v822_v54, %v793_v58 }
 0x137   : > { %v798_v63 = vpop.f32.mrb[2].mxu0  ;;  %v602_v2 = vpop.f32.mrb[3].mxu1  ;;  %v840_v11 = vadd.f32 %v822_v54, %v795_v60 }
 0x138   : > { %v799_v10 = vadd.f32 %v798_v63, %v600_v62  ;;  %v800_v3 = vpop.f32.mrb[3].mxu0  ;;  %v847_v16 = vmax.f32 %v839_v9, 0.0  ;;  %v995_v63 = vpop.permute.xlu1 %994 }
 0x139   : > { %v801_v6 = vadd.f32 %v800_v3, %v602_v2  ;;  %v848_v20 = vmax.f32 %v840_v11, 0.0 }
 0x13a   : > { %v841_v12 = vadd.f32 %v827_v61, %v799_v10  ;;  %v606_v13 = vpop.f32.mrb[4].mxu1  ;;  %v991_v10 = vpop.permute.xlu0 %990 }
 0x13b   : > { %v842_v8 = vadd.f32 %v827_v61, %v801_v6  ;;  %v804_v14 = vpop.f32.mrb[4].mxu0  ;;  %v608_v15 = vpop.f32.mrb[5].mxu1 }
 0x13c   : > { %v849_v17 = vmax.f32 %v841_v12, 0.0  ;;  %v805_v18 = vadd.f32 %v804_v14, %v606_v13  ;;  %v806_v19 = vpop.f32.mrb[5].mxu0 }
 0x13d   : > { %v850_v21 = vmax.f32 %v842_v8, 0.0  ;;  %v807_v22 = vadd.f32 %v806_v19, %v608_v15 }
 0x13e   : > { %v1416_v23 = vpack.c.bf16 %v849_v17, %v847_v16  ;;  %v612_v24 = vpop.f32.mrb[6].mxu1  ;;  %v843_v28 = vadd.f32 %v832_v4, %v805_v18 }
 0x13f   : > { %v810_v25 = vpop.f32.mrb[6].mxu0  ;;  %v614_v26 = vpop.f32.mrb[7].mxu1  ;;  %v1414_v27 = vpack.c.bf16 %v850_v21, %v848_v20  ;;  %v844_v31 = vadd.f32 %v832_v4, %v807_v22 }
 0x140   : > { %v811_v29 = vadd.f32 %v810_v25, %v612_v24  ;;  %v812_v30 = vpop.f32.mrb[7].mxu0  ;;  %v851_v36 = vmax.f32 %v843_v28, 0.0  ;;  %v999_v21 = vpop.permute.xlu1 %998 }
 0x141   : > { %v813_v33 = vadd.f32 %v812_v30, %v614_v26  ;;  %1415 = vmatprep.subr.bf16.mxu0 %v1414_v27  ;;  %1422 = vmatprep.subr.bf16.mxu1 %v1414_v27  ;;  %v852_v38 = vmax.f32 %v844_v31, 0.0 }
 0x142   : > { %v845_v34 = vadd.f32 %v837_v32, %v811_v29  ;;  %1417 = vmatpush1.bf16.msra.mxu0 %v1416_v23  ;;  %1424 = vmatpush1.bf16.msra.mxu1 %v1416_v23 }
 0x143   : > { %v846_v35 = vadd.f32 %v837_v32, %v813_v33  ;;  %v1551_v33 = vmov 1966171168  }
 0x144   : > { %v853_v37 = vmax.f32 %v845_v34, 0.0  ;;  %v1035_v34 = vunpack.c.l.s4 %v1551_v33 }
 0x145   : > { %v854_v39 = vmax.f32 %v846_v35, 0.0  ;;  %v1037_v35 = vlaneseq }
 0x146   : > { %v1420_v40 = vpack.c.bf16 %v853_v37, %v851_v36 }
 0x147   : > { %v1418_v41 = vpack.c.bf16 %v854_v39, %v852_v38  ;;  %vm1051_vm5 = vcmp.lt.s32.totalorder %v1037_v35, 256 }
 0x149   : > { %1419 = vmatprep.subr.bf16.mxu0 %v1418_v41  ;;  %1423 = vmatprep.subr.bf16.mxu1 %v1418_v41  ;;  %v1036_v41 = vunpack.c.0.s8 %v1035_v34 }
 0x14a   : > { %1421 = vmatpush1.bf16.msra.mxu0 %v1420_v40  ;;  %1425 = vmatpush1.bf16.msra.mxu1 %v1420_v40  ;;  %v1028_v40 = vstv %s1027_s10 }
 0x14d   : > { %1226 = vmatmul.mubr.msk.f32.vlgmr.msra.gmra.mrb[8].mxu0 %vm875_vm4, %v855_v42  ;;  %1228 = vmatmul.mubr.msk.f32.vlgmr.msra.gmra.mrb[8].mxu1 %vm875_vm4, %v857_v43  ;;  %v1038_v42 = vshrl.u32 %v1037_v35, 7 }
 0x14e   : > { %958 = vmatprep.mubr.f32.mxu0 %v1548_v51  ;;  %970 = vmatprep.mubr.f32.mxu1 %v1548_v51 }
 0x151   : > { %1227 = vmatmul.mubr.msk.f32.gmra.mrb[10].mxu0 %vm875_vm4, %v856_v44  ;;  %1229 = vmatmul.mubr.msk.f32.gmra.mrb[10].mxu1 %vm875_vm4, %v858_v45 }
 0x220   : > { %v966_v50 = vpop.f32.mrb[8].mxu1  ;;  %v954_v5 = vpop.f32.mrb[8].mxu0 }
 0x221   : > { %v968_v7 = vpop.f32.mrb[9].mxu1  ;;  %v955_v0 = vadd.f32 %v954_v5, %v861_v48  ;;  %v956_v1 = vpop.f32.mrb[9].mxu0  ;;  %v967_v53 = vadd.f32 %v966_v50, %v869_v47 }
 0x222   : > { %v957_v51 = vadd.f32 %v956_v1, %v861_v48  ;;  %v969_v54 = vadd.f32 %v968_v7, %v869_v47  ;;  %v1039_v47 = vsub.s32 %v1036_v41, %v1038_v42 }
 0x223   : > { %v977_v57 = vmax.f32 %v955_v0, 0.0  ;;  %v981_v3 = vmax.f32 %v967_v53, 0.0 }
 0x224   : > { %v960_v55 = vpop.f32.mrb[10].mxu0  ;;  %v972_v56 = vpop.f32.mrb[10].mxu1  ;;  %v978_v62 = vmax.f32 %v957_v51, 0.0  ;;  %v982_v6 = vmax.f32 %v969_v54, 0.0 }
 0x225   : > { %v961_v58 = vadd.f32 %v960_v55, %v865_v46  ;;  %v973_v59 = vadd.f32 %v972_v56, %v873_v52  ;;  %v962_v60 = vpop.f32.mrb[11].mxu0  ;;  %v974_v61 = vpop.f32.mrb[11].mxu1  ;;  %v1001_v4 = vmul.f32 %v987_v49, %v977_v57  ;;  %v1005_v17 = vmul.f32 %v995_v63, %v981_v3 }
 0x226   : > { %v963_v2 = vadd.f32 %v962_v60, %v865_v46  ;;  %v975_v9 = vadd.f32 %v974_v61, %v873_v52  ;;  %v1002_v14 = vmul.f32 %v987_v49, %v978_v62  ;;  %v1006_v19 = vmul.f32 %v995_v63, %v982_v6 }
 0x227   : > { %v979_v11 = vmax.f32 %v961_v58, 0.0  ;;  %v983_v13 = vmax.f32 %v973_v59, 0.0 }
 0x228   : > { %v980_v12 = vmax.f32 %v963_v2, 0.0  ;;  %v984_v15 = vmax.f32 %v975_v9, 0.0 }
 0x229   : > { %v1003_v8 = vmul.f32 %v991_v10, %v979_v11  ;;  %v1007_v22 = vmul.f32 %v999_v21, %v983_v13 }
 0x22a   : > { %v1004_v16 = vmul.f32 %v991_v10, %v980_v12  ;;  %v1008_v24 = vmul.f32 %v999_v21, %v984_v15 }
 0x22b   : > { %v1009_v18 = vadd.f32 %v1003_v8, %v1001_v4 }
 0x22c   : > { %v1018_v20 = vadd.f32 %v1004_v16, %v1002_v14 }
 0x22d   : > { %v1010_v23 = vadd.f32 %v1009_v18, %v1005_v17 }
 0x22e   : > { %v1019_v25 = vadd.f32 %v1018_v20, %v1006_v19 }
 0x22f   : > { %v1011_v26 = vadd.f32 %v1010_v23, %v1007_v22 }
 0x230   : > { %v1020_v27 = vadd.f32 %v1019_v25, %v1008_v24 }
 0x231   : > { %v1012_v28 = vrot.slane %v1011_v26, 4 }
 0x232   : > { %v1021_v29 = vrot.slane %v1020_v27, 4 }
 0x233   : > { %v1013_v30 = vadd.f32 %v1012_v28, %v1011_v26 }
 0x234   : > { %v1022_v31 = vadd.f32 %v1021_v29, %v1020_v27 }
 0x235   : > { %v1014_v32 = vrot.slane %v1013_v30, 2 }
 0x236   : > { %v1023_v36 = vrot.slane %v1022_v31, 2 }
 0x237   : > { %v1015_v37 = vadd.f32 %v1014_v32, %v1013_v30 }
 0x238   : > { %v1024_v38 = vadd.f32 %v1023_v36, %v1022_v31 }
 0x239   : > { %v1016_v39 = vrot.slane %v1015_v37, 1 }
 0x23a   : > { %v1025_v43 = vrot.slane %v1024_v38, 1 }
 0x23b   : > { %v1017_v44 = vadd.f32 %v1016_v39, %v1015_v37 }
 0x23c   : > { %v1026_v45 = vadd.f32 %v1025_v43, %v1024_v38 }
 0x23d   : > { %v1029_v46 = vadd.f32 %v1028_v40, %v1017_v44 }
 0x23e   : > { %v1030_v48 = vadd.f32 %v1028_v40, %v1026_v45 }
 0x240   : > { %v1033_v49 = vcombine.low %v1029_v46, %v1030_v48  ;;  %1061 = sbr.rel (!%p1634_p5) target bundleno = 610 (0x262), region = 52 }
 0x242   : > { %v1040_v50 = vrot.slane %v1033_v49, %v1039_v47 }
 0x244   : > { %v1047_v5 = vrot.slane %v1040_v50, %v1039_v47 }
 0x246   : > { %1053 = vst.msk [vmem:[%s313_s16] sm:$0x3] %vm1051_vm5, %v1047_v5 }
 0x247   : > { %s1973_s19 = smov (!%p1064_p11, %s1063_s19), 2 }
 0x248   : > { %s1905_s20 = sshll.u32 %s1973_s19, 4 }
 0x249   : > { %s1068_s21 = ssub.s32 32, %s1905_s20 }
 0x24a   : > { %1069 = vsyncadd %s1900_s17, %s1068_s21  ;;  %p1233_p12 = scmp.ne.s32.totalorder %s1905_s20, 0  ;;  %s1914_s12 = scalar_lea.hbm %s1961_s7, %s1645_s14 }
 0x24b   : > { %s1074_s24 = sshll.u32 %s313_s16, 4  ;;  %s1552_s25 = smov [#allocation3]   ;;  %s1075_s24 = int_to_ptr.vmem [resolvable:$true] %s1074_s24 }
 0x24c   : > { %s1483_s6 = scalar_lea.vmem %s1075_s24, %s1905_s20  ;;  %s1487_s30 = sshll.u32 %s1552_s25, 4  ;;  %s1488_s30 = int_to_ptr.vmem [resolvable:$false] %s1487_s30 }
 0x24d   : > { %p1484_p13 = scmp.ne.s32.totalorder %s1075_s24, %s1483_s6  ;;  %s1489_s9 = scalar_lea.vmem %s1488_s30, 64 }
 0x24e   : > { %p1490_p2 = scmp.lt.s32.totalorder %s1075_s24, %s1488_s30  ;;  %p1491_p3 = scmp.lt.s32.totalorder %s1489_s9, %s1483_s6 }
 0x24f   : > { %p1485_p0 = pnand %p1484_p13, %p1233_p12 }
 0x250   : > { %p1492_p4 = por %p1491_p3, %p1490_p2 }
 0x251   : > { %p1486_p1 = pneg %p1485_p0 }
 0x253   : > { %p1493_p5 = pnand %p1492_p4, %p1486_p1 }
 0x255   : > { %1496 = shalt.err (!%p1493_p5)
}
 0x256   : > { %s1497_s14 = scalar_lea.hbm %s1914_s12, %s1905_s20  ;;  %s1501_s16 = scalar_lea.hbm %s1961_s7, 48 }
 0x257   : > { %p1498_p7 = scmp.ne.s32.totalorder %s1914_s12, %s1497_s14  ;;  %p1502_p10 = scmp.lt.u32.totalorder %s1914_s12, %s1961_s7 }
 0x258   : > { %p1503_p11 = scmp.lt.u32.totalorder %s1501_s16, %s1497_s14  ;;  %p1505_p0 = scmp.lt.u32.totalorder %s1497_s14, %s1914_s12 }
 0x259   : > { %p1499_p8 = pnand %p1498_p7, %p1233_p12 }
 0x25a   : > { %p1504_p13 = por %p1503_p11, %p1502_p10 }
 0x25b   : > { %p1500_p9 = pneg %p1499_p8 }
 0x25c   : > { %p1506_p1 = por %p1505_p0, %p1504_p13 }
 0x25e   : > { %p1507_p2 = pnand %p1506_p1, %p1500_p9 }
 0x260   : > { %1510 = shalt.err (!%p1507_p2)
}
 0x261   : > { %1077 = dma.vmem_to_hbm [thread:$0]  (%p1233_p12), %s1075_s24, %s1905_s20, %s1914_s12, %s1900_s17  }
 0x262 PF: > { %p1439_p3 = scmp.ge.s32.totalorder %s1545_s29, 2  ;;  %s1086_s21 = sand.u32 1, %s1533_s26  }
 0x263   : > { %s1087_s22 = scalar_lea.sflag [#allocation4], %s1086_s21 }
 0x264   : > { %p1436_p4 = pnand %p1439_p3, %p1638_p6 }
 0x266   : > { %1528 = dma.done.wait (!%p1436_p4), %s1087_s22, 32  }
 0x267   : > { %1530 = vsyncadd (!%p1436_p4), %s1087_s22, 4294967264  ;;  %p18_p5 = scmp.ge.s32.totalorder %s1621_s8, 4   ;;  %s1968_s26 = smov %s1537_s27 }
 0x268   : > { %s1969_s27 = smov %s1541_s28  ;;  %s1970_s28 = smov %s1632_s11 }
 0x269   : > { %s1971_s29 = smov %s1621_s8  ;;  %20 = sbr.rel (!%p18_p5) target bundleno = 5 (0x5), region = 86 }
 0x270   :  { %1092 = vsyncpa [#allocation4], 1 }
 0x271   :  { %1094 = vsyncpa [#allocation4 + $0x1], 1 }

</bundles_post_ra>
